<compile_context>
chip_gen: v6e
topology: v6e:2x2x1
jax: 0.10.0
libtpu: 0.0.40
codegen_flags: <defaults>
</compile_context>

<pallas_src>
import functools

import jax
import jax.numpy as jnp
from jax.experimental import pallas as pl
from jax.experimental.pallas import tpu as pltpu


def _round_up(a, b):
    return (a + b - 1) // b * b


# ----------------------------------------------------------------------------
# Pallas kernel: one row-tile of the Highway layer.
#   x_ref : (tm, F)        input tile, f32
#   w_ref : (F, 2*Fp)      fused [W_T^T | pad | W_H^T | pad], bf16 (or f32)
#   b_ref : (1, 2*Fp)      fused [b_T | 0 | b_H | 0], f32
#   o_ref : (tm, F)        output tile
# ----------------------------------------------------------------------------
def _highway_kernel(x_ref, w_ref, b_ref, o_ref):
    x = x_ref[...]                                   # (tm, F) f32 (kept for skip path)
    feat = x.shape[-1]
    half = w_ref.shape[-1] // 2                      # = Fp = round_up(F, 128)

    # Single fused MXU matmul for both projections; operands in w_ref.dtype
    # (bf16 fast path), f32 accumulation + f32 bias add.
    gates = jnp.dot(x.astype(w_ref.dtype), w_ref[...],
                    preferred_element_type=jnp.float32) + b_ref[...]   # (tm, 2*Fp) f32

    # Both gate slices start on a 128-lane boundary (offset 0 and offset Fp).
    t_gate = jax.nn.sigmoid(gates[:, :feat])                           # transform gate
    h_pre = gates[:, half:half + feat]
    h = jnp.where(h_pre >= 0.0, h_pre, 0.01 * h_pre)                   # leaky_relu(0.01)

    # t*h + (1-t)*x  ==  x + t*(h - x)   (one fewer VPU multiply)
    o_ref[...] = (x + t_gate * (h - x)).astype(o_ref.dtype)


# ----------------------------------------------------------------------------
# One-time parameter fusion (hoisted out of the per-call path).
#   W_fused[:, 0:F]      = W_T^T      b_fused[0, 0:F]      = b_T
#   W_fused[:, Fp:Fp+F]  = W_H^T      b_fused[0, Fp:Fp+F]  = b_H
# Fp = round_up(F, 128) keeps both gates lane-aligned for any F.
# ----------------------------------------------------------------------------
def fuse_highway_params(w_t, b_t, w_h, b_h, *, matmul_dtype=jnp.bfloat16):
    feat = w_t.shape[0]
    fp = _round_up(feat, 128)
    w_fused = jnp.zeros((feat, 2 * fp), matmul_dtype)
    w_fused = w_fused.at[:, :feat].set(w_t.T.astype(matmul_dtype))
    w_fused = w_fused.at[:, fp:fp + feat].set(w_h.T.astype(matmul_dtype))
    b_fused = jnp.zeros((1, 2 * fp), jnp.float32)
    b_fused = b_fused.at[0, :feat].set(b_t.astype(jnp.float32))
    b_fused = b_fused.at[0, fp:fp + feat].set(b_h.astype(jnp.float32))
    return w_fused, b_fused


# ----------------------------------------------------------------------------
# Wrapper: flatten leading dims, tile rows with pl.cdiv (no pad / no slice).
# ----------------------------------------------------------------------------
def highway_forward(x, w_fused, b_fused, *, tile_m=512, out_dtype=None):
    """JAX/Pallas equivalent of Highway.forward.

    x                : (..., F)
    w_fused, b_fused : outputs of fuse_highway_params (precomputed once)
    """
    orig_shape = x.shape
    feat = orig_shape[-1]
    out_dtype = x.dtype if out_dtype is None else out_dtype

    x2 = x.reshape(-1, feat)
    if x2.dtype != jnp.float32:
        x2 = x2.astype(jnp.float32)
    m = x2.shape[0]
    two_fp = w_fused.shape[-1]

    # Row tile: either the whole (possibly small / odd) row count as a single
    # block, or a sublane-aligned tile_m; the last partial block is handled by
    # Pallas (no wrapper-side pad, no writeback past m).
    tm = m if m <= tile_m else tile_m
    grid = (pl.cdiv(m, tm),)

    # Explicit scoped-VMEM budget: double-buffered x/out tiles + resident
    # (double-buffered) fused weight/bias + headroom.
    vmem_bytes = (2 * tm * feat * 4
                  + 2 * tm * feat * jnp.dtype(out_dtype).itemsize
                  + 2 * feat * two_fp * jnp.dtype(w_fused.dtype).itemsize
                  + 2 * two_fp * 4
                  + (2 << 20))
    vmem_limit = int(min(max(vmem_bytes, 4 << 20), 64 << 20))

    out = pl.pallas_call(
        _highway_kernel,
        out_shape=jax.ShapeDtypeStruct((m, feat), out_dtype),
        grid_spec=pltpu.PrefetchScalarGridSpec(
            num_scalar_prefetch=0,
            grid=grid,
            in_specs=[
                pl.BlockSpec((tm, feat), lambda i: (i, 0)),           # x tile
                pl.BlockSpec((feat, two_fp), lambda i: (0, 0)),       # fused W (resident)
                pl.BlockSpec((1, two_fp), lambda i: (0, 0)),          # fused b (resident)
            ],
            out_specs=pl.BlockSpec((tm, feat), lambda i: (i, 0)),
        ),
        compiler_params=pltpu.CompilerParams(
            dimension_semantics=("parallel",),                        # independent row tiles
            vmem_limit_bytes=vmem_limit),
    )(x2, w_fused, b_fused)

    return out.reshape(orig_shape)


# ----------------------------------------------------------------------------
# Pure-JAX reference (mirrors the PyTorch module exactly, all f32).
# ----------------------------------------------------------------------------
def highway_reference(x, w_t, b_t, w_h, b_h):
    t = jax.nn.sigmoid(x @ w_t.T + b_t)
    h_pre = x @ w_h.T + b_h
    h = jnp.where(h_pre >= 0.0, h_pre, 0.01 * h_pre)          # F.leaky_relu default
    return t * h + (1.0 - t) * x


# ----------------------------------------------------------------------------
# Deterministic parameter init (torch nn.Linear: U(-1/sqrt(F), 1/sqrt(F))).
# ----------------------------------------------------------------------------
def init_params(key, features):
    k = 1.0 / jnp.sqrt(jnp.float32(features))
    k_wt, k_bt, k_wh, k_bh = jax.random.split(key, 4)

    def u(kk, shape):
        return jax.random.uniform(kk, shape, jnp.float32, -k, k)

    return {
        "w_t": u(k_wt, (features, features)),
        "b_t": u(k_bt, (features,)),
        "w_h": u(k_wh, (features, features)),
        "b_h": u(k_bh, (features,)),
    }


# ----------------------------------------------------------------------------
if __name__ == "__main__":
    FEATURES = 128        # lane-aligned -> gate slices / output stores are lane-dense
    B, S = 2, 8           # small leading dims -> 16 rows after flattening

    key = jax.random.PRNGKey(0)
    k_param, k_x = jax.random.split(key)

    params = init_params(k_param, FEATURES)
    x = jax.random.normal(k_x, (B, S, FEATURES), jnp.float32)

    # One-time fusion of the two Linear layers (hoisted out of the call path).
    w_fused, b_fused = fuse_highway_params(
        params["w_t"], params["b_t"], params["w_h"], params["b_h"],
        matmul_dtype=jnp.bfloat16)

    fwd = jax.jit(functools.partial(highway_forward, tile_m=512))
    out = jax.block_until_ready(fwd(x, w_fused, b_fused))

    assert out.shape == (B, S, FEATURES), out.shape
    assert out.dtype == jnp.float32

    ref = highway_reference(x, params["w_t"], params["b_t"],
                            params["w_h"], params["b_h"])
    assert bool(jnp.all(jnp.isfinite(out)))
    # bf16 matmul operands vs the f32 reference -> relaxed tolerance.
    assert bool(jnp.allclose(out, ref, rtol=2e-2, atol=2e-2)), \
        float(jnp.abs(out - ref).max())

    print("KERNEL_OK")
</pallas_src>

<mosaic_0001>
module attributes {stable_mosaic.version = 11 : i64} {
  func.func @_highway_kernel(%arg0: i32, %arg1: memref<16x128xf32, #tpu.memory_space<vmem>>, %arg2: memref<128x256xbf16, #tpu.memory_space<vmem>>, %arg3: memref<1x256xf32, #tpu.memory_space<vmem>>, %arg4: memref<16x128xf32, #tpu.memory_space<vmem>>) attributes {dimension_semantics = [#tpu.dimension_semantics<parallel>], iteration_bounds = array<i64: 1>, scalar_prefetch = 0 : i64, scratch_operands = 0 : i64, tpu.core_type = #tpu.core_type<tc>, window_params = [{transform_indices = @transform_0, window_bounds = array<i64: 16, 128>}, {pipeline_mode = #tpu.pipeline_mode<synchronous>, transform_indices = @transform_1, window_bounds = array<i64: 128, 256>}, {pipeline_mode = #tpu.pipeline_mode<synchronous>, transform_indices = @transform_2, window_bounds = array<i64: 1, 256>}, {transform_indices = @transform_3, window_bounds = array<i64: 16, 128>}]} {
    %c0 = arith.constant 0 : index
    %c0_0 = arith.constant 0 : index
    %0 = vector.load %arg1[%c0, %c0_0] : memref<16x128xf32, #tpu.memory_space<vmem>>, vector<16x128xf32>
    %1 = arith.truncf %0 : vector<16x128xf32> to vector<16x128xbf16>
    %c0_1 = arith.constant 0 : index
    %c0_2 = arith.constant 0 : index
    %2 = vector.load %arg2[%c0_1, %c0_2] : memref<128x256xbf16, #tpu.memory_space<vmem>>, vector<128x256xbf16>
    %cst = arith.constant dense<0.000000e+00> : vector<16x256xf32>
    %3 = tpu.matmul %1, %2, %cst {dimension_numbers = #tpu.dot_dimension_numbers<[1], [0], [0], [1], [0, 0, 1, 1], [], []>} : vector<16x128xbf16>, vector<128x256xbf16>, vector<16x256xf32> -> vector<16x256xf32>
    %c0_3 = arith.constant 0 : index
    %c0_4 = arith.constant 0 : index
    %4 = vector.load %arg3[%c0_3, %c0_4] : memref<1x256xf32, #tpu.memory_space<vmem>>, vector<1x256xf32>
    %5 = vector.broadcast %4 : vector<1x256xf32> to vector<16x256xf32>
    %6 = arith.addf %3, %5 : vector<16x256xf32>
    %7 = vector.extract_strided_slice %6 {offsets = [0, 0], sizes = [16, 128], strides = [1, 1]} : vector<16x256xf32> to vector<16x128xf32>
    %8 = arith.negf %7 : vector<16x128xf32>
    %9 = math.exp %8 : vector<16x128xf32>
    %cst_5 = arith.constant 1.000000e+00 : f32
    %10 = vector.broadcast %cst_5 : f32 to vector<16x128xf32>
    %11 = arith.addf %10, %9 : vector<16x128xf32>
    %12 = arith.divf %10, %11 : vector<16x128xf32>
    %13 = vector.extract_strided_slice %6 {offsets = [0, 128], sizes = [16, 128], strides = [1, 1]} : vector<16x256xf32> to vector<16x128xf32>
    %cst_6 = arith.constant 0.000000e+00 : f32
    %14 = vector.broadcast %cst_6 : f32 to vector<16x128xf32>
    %15 = arith.cmpf oge, %13, %14 : vector<16x128xf32>
    %cst_7 = arith.constant 0.00999999977 : f32
    %16 = vector.broadcast %cst_7 : f32 to vector<16x128xf32>
    %17 = arith.mulf %16, %13 : vector<16x128xf32>
    %18 = arith.select %15, %13, %17 : vector<16x128xi1>, vector<16x128xf32>
    %19 = arith.subf %18, %0 : vector<16x128xf32>
    %20 = arith.mulf %12, %19 : vector<16x128xf32>
    %21 = arith.addf %0, %20 : vector<16x128xf32>
    %c0_8 = arith.constant 0 : index
    %c0_9 = arith.constant 0 : index
    %22 = vector.load %arg4[%c0_8, %c0_9] : memref<16x128xf32, #tpu.memory_space<vmem>>, vector<16x128xf32>
    tpu.vector_store %arg4[%c0_8, %c0_9], %21 {strides = array<i32>} : memref<16x128xf32, #tpu.memory_space<vmem>>, vector<16x128xf32>,
    return
  }
  func.func @transform_0(%arg0: i32) -> (i32, i32) {
    %c0_i32 = arith.constant 0 : i32
    %c0_i32_0 = arith.constant 0 : i32
    return %arg0, %c0_i32 : i32, i32
  }
  func.func @transform_1(%arg0: i32) -> (i32, i32) {
    %c0_i32 = arith.constant 0 : i32
    %c0_i32_0 = arith.constant 0 : i32
    %c0_i32_1 = arith.constant 0 : i32
    return %c0_i32, %c0_i32_0 : i32, i32
  }
  func.func @transform_2(%arg0: i32) -> (i32, i32) {
    %c0_i32 = arith.constant 0 : i32
    %c0_i32_0 = arith.constant 0 : i32
    %c0_i32_1 = arith.constant 0 : i32
    return %c0_i32, %c0_i32_0 : i32, i32
  }
  func.func @transform_3(%arg0: i32) -> (i32, i32) {
    %c0_i32 = arith.constant 0 : i32
    %c0_i32_0 = arith.constant 0 : i32
    return %arg0, %c0_i32 : i32, i32
  }
}

</mosaic_0001>

<bundles_post_ra>
// kernel: highway_forward.1
= control target key start
LH: loop header
LB: loop body
LE: loop exit
PB: predicated region body
PF: predicated region fallthrough
CT: control target
= control target key end

     0   :  { %8 = vsyncpa [#allocation3], 0  ;;  %s411_s0 = inlined_call_operand.hbm [shape: f32[16,128], index: 0, kind: input, shape index: {}]   ;;  %s412_s1 = inlined_call_operand.hbm [shape: bf16[128,256], index: 1, kind: input, shape index: {}]   ;;  %s413_s2 = inlined_call_operand.vmem [shape: f32[1,256], index: 2, kind: input, shape index: {}]   ;;  %s414_s3 = inlined_call_operand.hbm [shape: f32[16,128], index: 3, kind: output, shape index: {}]  }
   0x1   :  { %9 = vsyncpa [#allocation6], 0 }
   0x2   :  { %10 = vsyncpa [#allocation4], 0  ;;  %s364_s12 = smov [#allocation2]  }
   0x3   :  { %s16_s13 = sshll.u32 %s364_s12, 4  ;;  %s17_s13 = int_to_ptr.vmem [resolvable:$true] %s16_s13 }
   0x4   :  { %s306_s14 = scalar_lea.vmem %s17_s13, 256  ;;  %p311_p1 = scmp.lt.s32.totalorder %s17_s13, %s17_s13 }
   0x5   :  { %p307_p0 = scmp.ne.s32.totalorder %s17_s13, %s306_s14  ;;  %p312_p2 = scmp.lt.s32.totalorder %s306_s14, %s306_s14 }
   0x7   :  { %p313_p3 = por %p312_p2, %p311_p1 }
   0x9   :  { %p314_p4 = pnand %p313_p3, %p307_p0 }
   0xb   :  { %317 = shalt.err (!%p314_p4)
}
   0xc   :  { %s365_s15 = smov 128   ;;  %s366_s16 = smov 8  }
   0xd   :  { %22 = dma.hbm_to_vmem [thread:$0]  %s411_s0, 256, %s17_s13, [#allocation3], %s365_s15, %s365_s15, %s366_s16  }
   0xe   :  { %s367_s19 = smov [#allocation5]  }
   0xf   :  { %s28_s20 = sshll.u32 %s367_s19, 4  ;;  %s29_s20 = int_to_ptr.vmem [resolvable:$true] %s28_s20 }
  0x10   :  { %s326_s21 = scalar_lea.vmem %s29_s20, 2048  ;;  %p331_p6 = scmp.lt.s32.totalorder %s29_s20, %s29_s20 }
  0x11   :  { %p327_p5 = scmp.ne.s32.totalorder %s29_s20, %s326_s21  ;;  %p332_p7 = scmp.lt.s32.totalorder %s326_s21, %s326_s21 }
  0x13   :  { %p333_p8 = por %p332_p7, %p331_p6 }
  0x15   :  { %p334_p9 = pnand %p333_p8, %p327_p5 }
  0x17   :  { %337 = shalt.err (!%p334_p9)
}
  0x18   :  { %34 = dma.hbm_to_vmem [thread:$0]  %s412_s1, 2048, %s29_s20, [#allocation6], %s365_s15, %s365_s15, %s366_s16  }
  0x19   :  { %358 = dma.done.wait [#allocation3], 256  }
  0x1a   :  { %359 = vsyncadd [#allocation3], 4294967040 }
  0x1b   :  { %360 = dma.done.wait [#allocation6], 2048  }
  0x1c   :  { %361 = vsyncadd [#allocation6], 4294965248  ;;  %v368_v0 = vmov 0   ;;  %v266_v1 = vld [vmem:[#allocation5 + $0x74] ss:$8 sps:$4 sm:$0xff]   ;;  %v65_v20 = vlaneseq }
  0x1d   :  { %187 = vmatprep.mubr.bf16.mxu0 %v368_v0  ;;  %v268_v2 = vld [vmem:[#allocation5 + $0x70] ss:$8 sps:$4 sm:$0xff]   ;;  %155 = vmatprep.subr.bf16.mxu0 %v266_v1  ;;  %v269_v3 = vld [vmem:[#allocation5 + $0x64] ss:$8 sps:$4 sm:$0xff]   ;;  %v271_v4 = vld [vmem:[#allocation5 + $0x60] ss:$8 sps:$4 sm:$0xff]  }
  0x1e   :  { %156 = vmatpush1.bf16.msra.mxu0 %v268_v2  ;;  %v272_v5 = vld [vmem:[#allocation5 + $0x54] ss:$8 sps:$4 sm:$0xff]   ;;  %v274_v6 = vld [vmem:[#allocation5 + $0x50] ss:$8 sps:$4 sm:$0xff]   ;;  %v275_v7 = vld [vmem:[#allocation5 + $0x44] ss:$8 sps:$4 sm:$0xff]  }
  0x1f   :  { %157 = vmatprep.subr.bf16.mxu0 %v269_v3  ;;  %v277_v8 = vld [vmem:[#allocation5 + $0x40] ss:$8 sps:$4 sm:$0xff]   ;;  %v278_v9 = vld [vmem:[#allocation5 + $0x34] ss:$8 sps:$4 sm:$0xff]   ;;  %v280_v10 = vld [vmem:[#allocation5 + $0x30] ss:$8 sps:$4 sm:$0xff]  }
  0x20   :  { %v281_v11 = vld [vmem:[#allocation5 + $0x24] ss:$8 sps:$4 sm:$0xff]   ;;  %v283_v12 = vld [vmem:[#allocation5 + $0x20] ss:$8 sps:$4 sm:$0xff]   ;;  %v284_v13 = vld [vmem:[#allocation5 + $0x14] ss:$8 sps:$4 sm:$0xff]  }
  0x21   :  { %v286_v14 = vld [vmem:[#allocation5 + $0x10] ss:$8 sps:$4 sm:$0xff]   ;;  %v287_v15 = vld [vmem:[#allocation5 + $0x4] ss:$8 sps:$4 sm:$0xff]   ;;  %v289_v16 = vld [vmem:[#allocation5] ss:$8 sps:$4 sm:$0xff]  }
  0x22   :  { %158 = vmatpush1.bf16.msra.mxu0 %v271_v4  ;;  %v44_v17 = vld [vmem:[#allocation2] sm:$0xff]  ;;  %v45_v18 = vld [vmem:[#allocation2 + $0x8] sm:$0xff]  ;;  %v66_v21 = vshrl.u32 %v65_v20, 7 }
  0x23   :  { %159 = vmatprep.subr.bf16.mxu0 %v272_v5  ;;  %v46_v19 = vpack.c.bf16 %v45_v18, %v44_v17  ;;  %v63_v23 = vld [vmem:[%s413_s2] sm:$0x3]  ;;  %s369_s2 = smov [#allocation7]  }
  0x24   :  { %v67_v22 = vsub.s32 0, %v66_v21  ;;  %v71_v32 = vsub.s32 1, %v66_v21  ;;  %s229_s24 = sshll.u32 %s369_s2, 4  ;;  %s230_s24 = int_to_ptr.vmem [resolvable:$true] %s229_s24 }
  0x25   :  { %s338_s25 = scalar_lea.vmem %s230_s24, 256  ;;  %p343_p11 = scmp.lt.s32.totalorder %s230_s24, %s230_s24 }
  0x26   :  { %160 = vmatpush1.bf16.msra.mxu0 %v274_v6  ;;  %v68_v24 = vrot.slane %v63_v23, %v67_v22  ;;  %v72_v34 = vrot.slane %v63_v23, %v71_v32  ;;  %p339_p10 = scmp.ne.s32.totalorder %s230_s24, %s338_s25  ;;  %p344_p12 = scmp.lt.s32.totalorder %s338_s25, %s338_s25 }
  0x27   :  { %161 = vmatprep.subr.bf16.mxu0 %v275_v7 }
  0x28   :  { %p345_p13 = por %p344_p12, %p343_p11 }
  0x2a   :  { %162 = vmatpush1.bf16.msra.mxu0 %v277_v8  ;;  %p346_p0 = pnand %p345_p13, %p339_p10 }
  0x2b   :  { %163 = vmatprep.subr.bf16.mxu0 %v278_v9 }
  0x2e   :  { %164 = vmatpush1.bf16.msra.mxu0 %v280_v10 }
  0x2f   :  { %165 = vmatprep.subr.bf16.mxu0 %v281_v11 }
  0x32   :  { %166 = vmatpush1.bf16.msra.mxu0 %v283_v12 }
  0x33   :  { %167 = vmatprep.subr.bf16.mxu0 %v284_v13 }
  0x36   :  { %168 = vmatpush1.bf16.msra.mxu0 %v286_v14 }
  0x37   :  { %169 = vmatprep.subr.bf16.mxu0 %v287_v15 }
  0x3a   :  { %170 = vmatpush1.bf16.msra.mxu0 %v289_v16 }
  0x3d   :  { %188 = vmatmul.mubr.bf16.vlgmr.msra.gmra.mxu0 %v46_v19 }
  0xfd   :  { %v189_v25 = vpop.f32.mrf.mxu0 }
  0xfe   :  { %v190_v26 = vadd.f32 %v189_v25, %v68_v24 }
  0xff   :  { %v191_v27 = vpop.f32.mrf.mxu0 }
 0x100   :  { %v258_v28 = vmul.f32 -1.442695, %v190_v26  ;;  %v192_v37 = vadd.f32 %v191_v27, %v72_v34 }
 0x101   :  { %v193_v29 = vpop.f32.mrf.mxu0 }
 0x102   :  { %290 = vpow2.f32 %v258_v28  ;;  %v194_v30 = vadd.f32 %v193_v29, %v68_v24  ;;  %v212_v40 = vmul.f32 0.01, %v192_v37  ;;  %vm210_vm0 = vcmp.ge.f32.partialorder %v192_v37, 0.0 }
 0x103   :  { %v195_v39 = vpop.f32.mrf.mxu0 }
 0x104   :  { %v259_v31 = vmul.f32 -1.442695, %v194_v30  ;;  %v196_v41 = vadd.f32 %v195_v39, %v72_v34  ;;  %v214_v42 = vsel %vm210_vm0, %v192_v37, %v212_v40 }
 0x105   :  { %v216_v44 = vsub.f32 %v214_v42, %v44_v17 }
 0x106   :  { %292 = vpow2.f32 %v259_v31  ;;  %v213_v43 = vmul.f32 0.01, %v196_v41  ;;  %vm211_vm1 = vcmp.ge.f32.partialorder %v196_v41, 0.0 }
 0x108   :  { %v215_v46 = vsel %vm211_vm1, %v196_v41, %v213_v43 }
 0x109   :  { %v217_v48 = vsub.f32 %v215_v46, %v45_v18 }
 0x10f   :  { %v291_v33 = vpop.eup %290 }
 0x110   :  { %v204_v35 = vadd.f32 1.0, %v291_v33 }
 0x112   :  { %294 = vrcp.f32 %v204_v35 }
 0x113   :  { %v293_v36 = vpop.eup %292 }
 0x114   :  { %v205_v38 = vadd.f32 1.0, %v293_v36 }
 0x116   :  { %296 = vrcp.f32 %v205_v38 }
 0x11f   :  { %v295_v45 = vpop.eup %294 }
 0x120   :  { %v218_v47 = vmul.f32 %v295_v45, %v216_v44 }
 0x122   :  { %v220_v49 = vadd.f32 %v218_v47, %v44_v17 }
 0x123   :  { %v297_v50 = vpop.eup %296 }
 0x124   :  { %v219_v51 = vmul.f32 %v297_v50, %v217_v48  ;;  %222 = vst [vmem:[#allocation7] sm:$0xff] %v220_v49 }
 0x126   :  { %v221_v52 = vadd.f32 %v219_v51, %v45_v18 }
 0x128   :  { %223 = vst [vmem:[#allocation7 + $0x8] sm:$0xff] %v221_v52 }
 0x129   :  { %349 = shalt.err (!%p346_p0)
}
 0x12a   :  { %235 = dma.vmem_to_hbm [thread:$0]  %s230_s24, 256, %s414_s3, [#allocation4], %s365_s15, %s365_s15, %s366_s16  }
 0x12b   :  { %362 = dma.done.wait [#allocation4], 256  }
 0x12c   :  { %363 = vsyncadd [#allocation4], 4294967040 }
 0x12d   :  { %239 = vsyncpa [#allocation3], 1 }
 0x12e   :  { %240 = vsyncpa [#allocation6], 1 }
 0x12f   :  { %241 = vsyncpa [#allocation4], 1 }

</bundles_post_ra>
